<compile_context>
chip_gen: v7x
topology: tpu7x:2x2x1
jax: 0.10.0
libtpu: 0.0.40
codegen_flags: <defaults>
</compile_context>

<pallas_src>
import numpy as np

import jax
import jax.numpy as jnp
from jax.experimental import pallas as pl
from jax.experimental.pallas import tpu as pltpu

EPS = 1e-5


def _round_up(v, m):
    return ((v + m - 1) // m) * m


# ----------------------------------------------------------------------------
# In-kernel helpers
# ----------------------------------------------------------------------------
def _masked_bn(y, gamma, beta, mask, inv_count, eps=EPS):
    """BatchNorm (batch stats, biased var) over the valid columns, single pass.

    `ym = y*mask` is computed once and reused (mask is {0,1} so ym*y == mask*y*y).
    """
    ym = y * mask
    s = jnp.sum(ym, axis=1, keepdims=True)
    ss = jnp.sum(ym * y, axis=1, keepdims=True)
    mean = s * inv_count
    var = ss * inv_count - mean * mean
    # TODO(synk): two-pass / Welford variance when BN becomes a tiled cross-grid
    # reduction at real ResNet sizes (single pass is fine at 5e-2 tolerance).
    return (y - mean) * jax.lax.rsqrt(var + eps) * gamma + beta


def _fill_im2col(p_ref, xb, offsets, wf, mf_pad):
    """Build the im2col matrix in VMEM, one row-block per static tap.

    Each tap (oy, ox) contributes a zero-filled column shift of the (already
    bf16) activation by d = oy*wf + ox: one wide store of the shifted data plus
    one tiny store zeroing the |d| wrapped columns.  No full zero-init pass and
    no per-tap f32->bf16 casts.  Every column of the scratch is written so the
    MXU never sees uninitialised VMEM (a NaN there would poison the masked BN
    statistics downstream).
    """
    c = xb.shape[0]
    for t, (oy, ox) in enumerate(offsets):
        d = oy * wf + ox
        r0, r1 = t * c, (t + 1) * c
        if d > 0:
            p_ref[r0:r1, 0:mf_pad - d] = xb[:, d:]
            p_ref[r0:r1, mf_pad - d:] = jnp.zeros((c, d), p_ref.dtype)
        elif d < 0:
            p_ref[r0:r1, 0:-d] = jnp.zeros((c, -d), p_ref.dtype)
            p_ref[r0:r1, (-d):] = xb[:, :mf_pad + d]
        else:
            p_ref[r0:r1, :] = xb
    # Zero the K-padding rows once: their weight columns are zero, but
    # 0 * garbage (possibly NaN) would still poison the f32 accumulator.
    k_real = len(offsets) * c
    if p_ref.shape[0] > k_real:
        p_ref[k_real:, :] = jnp.zeros((p_ref.shape[0] - k_real, mf_pad), p_ref.dtype)


def make_basicblock_kernel(stride, in_planes, planes, n, hf, wf, ho, wo, mf_pad,
                           eps=EPS):
    """Whole-BasicBlock fused kernel (single invocation, everything in VMEM)."""
    inv_count = 1.0 / float(n * ho * wo)

    if stride != 1:
        # conv1 works on 4*in_planes phase channels with 2x2 stride-1 taps.
        offsets1 = [(dy, dx) for dy in range(2) for dx in range(2)]
    else:
        offsets1 = [(kh - 1, kw - 1) for kh in range(3) for kw in range(3)]
    offsets2 = [(kh - 1, kw - 1) for kh in range(3) for kw in range(3)]

    def kernel(*refs):
        if stride != 1:
            (in1_ref, mask_ref, w1_ref, g1_ref, b1_ref, w2_ref, g2_ref, b2_ref,
             wsc_ref, gsc_ref, bsc_ref, o_ref, p1_ref, p2_ref) = refs
        else:
            (in1_ref, mask_ref, w1_ref, g1_ref, b1_ref, w2_ref, g2_ref, b2_ref,
             o_ref, p1_ref, p2_ref) = refs

        mask = mask_ref[...]            # (1, Mf_pad) f32: 1.0 at real output pixels
        xb = in1_ref[...]               # (C1, Mf_pad) bf16 (single upfront cast)

        # conv1 -> bn1 -> relu  (ONE bf16 MXU matmul, f32 accumulation)
        _fill_im2col(p1_ref, xb, offsets1, wf, mf_pad)
        y1 = jnp.dot(w1_ref[...], p1_ref[...], preferred_element_type=jnp.float32)
        a1 = jnp.maximum(
            _masked_bn(y1, g1_ref[...], b1_ref[...], mask, inv_count, eps), 0.0) * mask

        # conv2 -> bn2
        _fill_im2col(p2_ref, a1.astype(jnp.bfloat16), offsets2, wf, mf_pad)
        y2 = jnp.dot(w2_ref[...], p2_ref[...], preferred_element_type=jnp.float32)
        o2 = _masked_bn(y2, g2_ref[...], b2_ref[...], mask, inv_count, eps)

        # shortcut
        if stride != 1:
            # 1x1 stride-2 conv == matmul against the (py=1,px=1) phase block.
            # That phase was reordered to rows [0, in_planes) and the weights are
            # zero-padded over the other phases, so the matmul consumes all of xb
            # with an aligned K (no odd sublane slice).
            ysc = jnp.dot(wsc_ref[...], xb, preferred_element_type=jnp.float32)
            sc = _masked_bn(ysc, gsc_ref[...], bsc_ref[...], mask, inv_count, eps)
        else:
            sc = xb                     # identity (in_planes == planes); bf16 upcasts in the add

        o_ref[...] = jnp.maximum(o2 + sc, 0.0)

    return kernel


# ----------------------------------------------------------------------------
# BasicBlock module (deterministic synthetic parameters)
# ----------------------------------------------------------------------------
class BasicBlockPallas:
    def __init__(self, in_planes, planes, stride, key):
        self.in_planes, self.planes, self.stride = in_planes, planes, stride
        if stride == 1:
            assert in_planes == planes, "identity shortcut needs in_planes == planes"
        ks = jax.random.split(key, 9)

        def conv_init(k, cout, cin, kh, kw):
            fan_in = cin * kh * kw
            bound = 1.0 / float(np.sqrt(fan_in))
            return jax.random.uniform(k, (cout, cin, kh, kw), jnp.float32, -bound, bound)

        self.w1 = conv_init(ks[0], planes, in_planes, 3, 3)
        self.g1 = 1.0 + 0.1 * jax.random.normal(ks[1], (planes,), jnp.float32)
        self.b1 = 0.1 * jax.random.normal(ks[2], (planes,), jnp.float32)
        self.w2 = conv_init(ks[3], planes, planes, 3, 3)
        self.g2 = 1.0 + 0.1 * jax.random.normal(ks[4], (planes,), jnp.float32)
        self.b2 = 0.1 * jax.random.normal(ks[5], (planes,), jnp.float32)
        if stride != 1:
            self.wsc = conv_init(ks[6], planes, in_planes, 1, 1)
            self.gsc = 1.0 + 0.1 * jax.random.normal(ks[7], (planes,), jnp.float32)
            self.bsc = 0.1 * jax.random.normal(ks[8], (planes,), jnp.float32)

        # --- one-time weight repacking (out of the hot path) -------------------
        if stride != 1:
            # conv1 column = tap*(4*cin) + phase*cin + c, with kh = 2*dy + py,
            # kw = 2*dx + px.  Phase order is rolled by one so (py,px)=(1,1)
            # (the shortcut phase) lands at phase index 0: ph = (2*py+px+1) % 4.
            w1n = np.asarray(self.w1)
            w1p = np.zeros((planes, 4, 4 * in_planes), np.float32)
            for kh in range(3):
                for kw in range(3):
                    dy, py = kh // 2, kh % 2
                    dx, px = kw // 2, kw % 2
                    tap = dy * 2 + dx
                    ph = (py * 2 + px + 1) % 4
                    w1p[:, tap, ph * in_planes:(ph + 1) * in_planes] = w1n[:, :, kh, kw]
            k1 = 16 * in_planes
            w1flat = w1p.reshape(planes, k1)
            # 1x1 shortcut weights, zero-padded over the non-(1,1) phases so the
            # shortcut matmul has an aligned K = 4*in_planes.
            wscp = np.zeros((planes, 4 * in_planes), np.float32)
            wscp[:, :in_planes] = np.asarray(self.wsc)[:, :, 0, 0]
            self.wscp = jnp.asarray(wscp, jnp.bfloat16)
            self.gscc = self.gsc.reshape(planes, 1)
            self.bscc = self.bsc.reshape(planes, 1)
        else:
            k1 = 9 * in_planes
            w1flat = np.asarray(self.w1).transpose(0, 2, 3, 1).reshape(planes, k1)
        k2 = 9 * planes
        w2flat = np.asarray(self.w2).transpose(0, 2, 3, 1).reshape(planes, k2)

        # Pad K (taps*C) to a multiple of 16: bf16 sublane-tile aligned scratch
        # and weights (zero columns are a no-op in the matmul).
        self.k1_pad = _round_up(k1, 16)
        self.k2_pad = _round_up(k2, 16)
        self.w1p = jnp.asarray(np.pad(w1flat, ((0, 0), (0, self.k1_pad - k1))),
                               jnp.bfloat16)
        self.w2p = jnp.asarray(np.pad(w2flat, ((0, 0), (0, self.k2_pad - k2))),
                               jnp.bfloat16)

        self.g1c = self.g1.reshape(planes, 1)
        self.b1c = self.b1.reshape(planes, 1)
        self.g2c = self.g2.reshape(planes, 1)
        self.b2c = self.b2.reshape(planes, 1)

        self._fwd = jax.jit(self._forward)

    # Per-call layout plumbing (fused under jax.jit) + one fused pallas_call.
    def _forward(self, x_nchw):
        n, cin, h, w = x_nchw.shape
        s = self.stride
        ho, wo = h // s, w // s

        if s != 1:
            hf, wf = ho + 2, wo + 2
            hi, wi = (h + 2) // 2, (w + 2) // 2
            # Space-to-depth of the 1-padded input: the stride-2 3x3 conv becomes
            # a stride-1 2x2 conv over 4*cin phase channels (no redundant compute).
            xp = jnp.pad(x_nchw, ((0, 0), (0, 0), (1, 1), (1, 1)))
            xp = xp.reshape(n, cin, hi, 2, wi, 2)
            xp = jnp.transpose(xp, (3, 5, 1, 0, 2, 4))           # (py, px, c, n, i, j)
            xp = xp.reshape(4, cin, n, hi, wi)
            xp = jnp.roll(xp, 1, axis=0)    # phase order (1,1),(0,0),(0,1),(1,0)
            xp = xp.reshape(4 * cin, n, hi, wi)
            xp = jnp.pad(xp, ((0, 0), (0, 0), (0, hf - hi), (0, wf - wi)))
            in1 = xp.reshape(4 * cin, n * hf * wf)
        else:
            hf, wf = h + 2, w + 2
            xf = jnp.pad(x_nchw, ((0, 0), (0, 0), (0, 2), (0, 2)))
            in1 = jnp.transpose(xf, (1, 0, 2, 3)).reshape(cin, n * hf * wf)

        mf = n * hf * wf
        mf_pad = _round_up(mf, 128)     # lane-dense last dim (full-width stores)

        # Zero lane-padding + single upfront bf16 cast (half-size input DMA).
        in1 = jnp.pad(in1, ((0, 0), (0, mf_pad - mf))).astype(jnp.bfloat16)

        # Validity mask over the padded flattened frame (real output pixels only).
        rr = jax.lax.broadcasted_iota(jnp.int32, (hf, wf), 0)
        cc = jax.lax.broadcasted_iota(jnp.int32, (hf, wf), 1)
        m2 = ((rr < ho) & (cc < wo)).astype(jnp.float32)
        mask = jnp.broadcast_to(m2[None], (n, hf, wf)).reshape(1, mf)
        mask = jnp.pad(mask, ((0, 0), (0, mf_pad - mf)))

        p = self.planes
        kernel = make_basicblock_kernel(s, self.in_planes, p, n, hf, wf, ho, wo, mf_pad)

        args = [in1, mask, self.w1p, self.g1c, self.b1c, self.w2p, self.g2c, self.b2c]
        if s != 1:
            args += [self.wscp, self.gscc, self.bscc]

        out2d = pl.pallas_call(
            kernel,
            grid=(1,),
            in_specs=[pl.BlockSpec(a.shape, lambda i, nd=a.ndim: (0,) * nd)
                      for a in args],
            out_specs=pl.BlockSpec((p, mf_pad), lambda i: (0, 0)),
            out_shape=jax.ShapeDtypeStruct((p, mf_pad), jnp.float32),
            scratch_shapes=[pltpu.VMEM((self.k1_pad, mf_pad), jnp.bfloat16),
                            pltpu.VMEM((self.k2_pad, mf_pad), jnp.bfloat16)],
            compiler_params=pltpu.CompilerParams(
                dimension_semantics=("arbitrary",)),
        )(*args)

        # TODO(synk): emit bf16 / already-cropped output from the kernel (tiled
        # out_specs index_map) to remove this crop+transpose HBM round-trip at
        # real, memory-bound ResNet sizes.
        out = out2d[:, :mf].reshape(p, n, hf, wf)[:, :, :ho, :wo]
        return jnp.transpose(out, (1, 0, 2, 3))                  # -> NCHW

    def __call__(self, x_nchw):
        return self._fwd(x_nchw)


# ----------------------------------------------------------------------------
# Pure-JAX reference for validation
# ----------------------------------------------------------------------------
def ref_forward(block, x_nchw):
    x = jnp.transpose(x_nchw, (0, 2, 3, 1))

    def conv(a, wgt, s, p):
        return jax.lax.conv_general_dilated(
            a, jnp.transpose(wgt, (2, 3, 1, 0)), (s, s), [(p, p), (p, p)],
            dimension_numbers=("NHWC", "HWIO", "NHWC"))

    def bn(y, g, b, eps=EPS):
        m = jnp.mean(y, axis=(0, 1, 2), keepdims=True)
        v = jnp.mean((y - m) ** 2, axis=(0, 1, 2), keepdims=True)
        return (y - m) / jnp.sqrt(v + eps) * g + b

    o1 = jax.nn.relu(bn(conv(x, block.w1, block.stride, 1), block.g1, block.b1))
    o2 = bn(conv(o1, block.w2, 1, 1), block.g2, block.b2)
    if block.stride != 1:
        sc = bn(conv(x, block.wsc, block.stride, 0), block.gsc, block.bsc)
    else:
        sc = x
    out = jax.nn.relu(o2 + sc)
    return jnp.transpose(out, (0, 3, 1, 2))


if __name__ == "__main__":
    key = jax.random.PRNGKey(0)
    kx, kp, kx2, kp2 = jax.random.split(key, 4)

    # bf16 MXU operands (f32 accumulation / f32 BN math) -> looser tolerance.
    ATOL = RTOL = 5e-2

    # Case 1: stride-2 block with projection shortcut (BasicBlock(4, 8, stride=2)).
    N, C_IN, H, W = 2, 4, 16, 16
    PLANES, STRIDE = 8, 2
    x = jax.random.normal(kx, (N, C_IN, H, W), jnp.float32)
    block = BasicBlockPallas(C_IN, PLANES, STRIDE, kp)
    out = jax.block_until_ready(block(x))
    ref = jax.block_until_ready(ref_forward(block, x))
    assert out.shape == (N, PLANES, H // STRIDE, W // STRIDE), out.shape
    if not jnp.allclose(out, ref, atol=ATOL, rtol=RTOL):
        err = float(jnp.max(jnp.abs(out - ref)))
        raise AssertionError(f"stride-2 Pallas BasicBlock mismatch (max abs err {err})")

    # Case 2: stride-1 block with identity shortcut (BasicBlock(8, 8, stride=1)).
    x2 = jax.random.normal(kx2, (N, PLANES, H, W), jnp.float32)
    block2 = BasicBlockPallas(PLANES, PLANES, 1, kp2)
    out2 = jax.block_until_ready(block2(x2))
    ref2 = jax.block_until_ready(ref_forward(block2, x2))
    assert out2.shape == (N, PLANES, H, W), out2.shape
    if not jnp.allclose(out2, ref2, atol=ATOL, rtol=RTOL):
        err = float(jnp.max(jnp.abs(out2 - ref2)))
        raise AssertionError(f"stride-1 Pallas BasicBlock mismatch (max abs err {err})")

    print("KERNEL_OK")
</pallas_src>

<mosaic_0001>
module attributes {stable_mosaic.version = 11 : i64} {
  func.func @kernel(%arg0: i32, %arg1: memref<16x256xbf16, #tpu.memory_space<vmem>>, %arg2: memref<1x256xf32, #tpu.memory_space<vmem>>, %arg3: memref<8x64xbf16, #tpu.memory_space<vmem>>, %arg4: memref<8x1xf32, #tpu.memory_space<vmem>>, %arg5: memref<8x1xf32, #tpu.memory_space<vmem>>, %arg6: memref<8x80xbf16, #tpu.memory_space<vmem>>, %arg7: memref<8x1xf32, #tpu.memory_space<vmem>>, %arg8: memref<8x1xf32, #tpu.memory_space<vmem>>, %arg9: memref<8x16xbf16, #tpu.memory_space<vmem>>, %arg10: memref<8x1xf32, #tpu.memory_space<vmem>>, %arg11: memref<8x1xf32, #tpu.memory_space<vmem>>, %arg12: memref<8x256xf32, #tpu.memory_space<vmem>>, %arg13: memref<64x256xbf16, #tpu.memory_space<vmem>>, %arg14: memref<80x256xbf16, #tpu.memory_space<vmem>>) attributes {dimension_semantics = [#tpu.dimension_semantics<arbitrary>], iteration_bounds = array<i64: 1>, scalar_prefetch = 0 : i64, scratch_operands = 2 : i64, tpu.core_type = #tpu.core_type<tc>, window_params = [{pipeline_mode = #tpu.pipeline_mode<synchronous>, transform_indices = @transform_0, window_bounds = array<i64: 16, 256>}, {pipeline_mode = #tpu.pipeline_mode<synchronous>, transform_indices = @transform_1, window_bounds = array<i64: 1, 256>}, {pipeline_mode = #tpu.pipeline_mode<synchronous>, transform_indices = @transform_2, window_bounds = array<i64: 8, 64>}, {pipeline_mode = #tpu.pipeline_mode<synchronous>, transform_indices = @transform_3, window_bounds = array<i64: 8, 1>}, {pipeline_mode = #tpu.pipeline_mode<synchronous>, transform_indices = @transform_4, window_bounds = array<i64: 8, 1>}, {pipeline_mode = #tpu.pipeline_mode<synchronous>, transform_indices = @transform_5, window_bounds = array<i64: 8, 80>}, {pipeline_mode = #tpu.pipeline_mode<synchronous>, transform_indices = @transform_6, window_bounds = array<i64: 8, 1>}, {pipeline_mode = #tpu.pipeline_mode<synchronous>, transform_indices = @transform_7, window_bounds = array<i64: 8, 1>}, {pipeline_mode = #tpu.pipeline_mode<synchronous>, transform_indices = @transform_8, window_bounds = array<i64: 8, 16>}, {pipeline_mode = #tpu.pipeline_mode<synchronous>, transform_indices = @transform_9, window_bounds = array<i64: 8, 1>}, {pipeline_mode = #tpu.pipeline_mode<synchronous>, transform_indices = @transform_10, window_bounds = array<i64: 8, 1>}, {pipeline_mode = #tpu.pipeline_mode<synchronous>, transform_indices = @transform_11, window_bounds = array<i64: 8, 256>}]} {
    %c0 = arith.constant 0 : index
    %c0_0 = arith.constant 0 : index
    %0 = vector.load %arg2[%c0, %c0_0] : memref<1x256xf32, #tpu.memory_space<vmem>>, vector<1x256xf32>
    %c0_1 = arith.constant 0 : index
    %c0_2 = arith.constant 0 : index
    %1 = vector.load %arg1[%c0_1, %c0_2] : memref<16x256xbf16, #tpu.memory_space<vmem>>, vector<16x256xbf16>
    %c0_3 = arith.constant 0 : index
    %c0_4 = arith.constant 0 : index
    %2 = vector.load %arg13[%c0_3, %c0_4] : memref<64x256xbf16, #tpu.memory_space<vmem>>, vector<16x256xbf16>
    tpu.vector_store %arg13[%c0_3, %c0_4], %1 {strides = array<i32>} : memref<64x256xbf16, #tpu.memory_space<vmem>>, vector<16x256xbf16>,
    %3 = vector.extract_strided_slice %1 {offsets = [0, 1], sizes = [16, 255], strides = [1, 1]} : vector<16x256xbf16> to vector<16x255xbf16>
    %c16 = arith.constant 16 : index
    %c0_5 = arith.constant 0 : index
    %4 = vector.load %arg13[%c16, %c0_5] : memref<64x256xbf16, #tpu.memory_space<vmem>>, vector<16x255xbf16>
    tpu.vector_store %arg13[%c16, %c0_5], %3 {strides = array<i32>} : memref<64x256xbf16, #tpu.memory_space<vmem>>, vector<16x255xbf16>,
    %cst = arith.constant 0.000000e+00 : bf16
    %5 = vector.broadcast %cst : bf16 to vector<16x1xbf16>
    %c16_6 = arith.constant 16 : index
    %c255 = arith.constant 255 : index
    %6 = vector.load %arg13[%c16_6, %c255] : memref<64x256xbf16, #tpu.memory_space<vmem>>, vector<16x1xbf16>
    tpu.vector_store %arg13[%c16_6, %c255], %5 {strides = array<i32>} : memref<64x256xbf16, #tpu.memory_space<vmem>>, vector<16x1xbf16>,
    %7 = vector.extract_strided_slice %1 {offsets = [0, 10], sizes = [16, 246], strides = [1, 1]} : vector<16x256xbf16> to vector<16x246xbf16>
    %c32 = arith.constant 32 : index
    %c0_7 = arith.constant 0 : index
    %8 = vector.load %arg13[%c32, %c0_7] : memref<64x256xbf16, #tpu.memory_space<vmem>>, vector<16x246xbf16>
    tpu.vector_store %arg13[%c32, %c0_7], %7 {strides = array<i32>} : memref<64x256xbf16, #tpu.memory_space<vmem>>, vector<16x246xbf16>,
    %cst_8 = arith.constant 0.000000e+00 : bf16
    %9 = vector.broadcast %cst_8 : bf16 to vector<16x10xbf16>
    %c32_9 = arith.constant 32 : index
    %c246 = arith.constant 246 : index
    %10 = vector.load %arg13[%c32_9, %c246] : memref<64x256xbf16, #tpu.memory_space<vmem>>, vector<16x10xbf16>
    tpu.vector_store %arg13[%c32_9, %c246], %9 {strides = array<i32>} : memref<64x256xbf16, #tpu.memory_space<vmem>>, vector<16x10xbf16>,
    %11 = vector.extract_strided_slice %1 {offsets = [0, 11], sizes = [16, 245], strides = [1, 1]} : vector<16x256xbf16> to vector<16x245xbf16>
    %c48 = arith.constant 48 : index
    %c0_10 = arith.constant 0 : index
    %12 = vector.load %arg13[%c48, %c0_10] : memref<64x256xbf16, #tpu.memory_space<vmem>>, vector<16x245xbf16>
    tpu.vector_store %arg13[%c48, %c0_10], %11 {strides = array<i32>} : memref<64x256xbf16, #tpu.memory_space<vmem>>, vector<16x245xbf16>,
    %cst_11 = arith.constant 0.000000e+00 : bf16
    %13 = vector.broadcast %cst_11 : bf16 to vector<16x11xbf16>
    %c48_12 = arith.constant 48 : index
    %c245 = arith.constant 245 : index
    %14 = vector.load %arg13[%c48_12, %c245] : memref<64x256xbf16, #tpu.memory_space<vmem>>, vector<16x11xbf16>
    tpu.vector_store %arg13[%c48_12, %c245], %13 {strides = array<i32>} : memref<64x256xbf16, #tpu.memory_space<vmem>>, vector<16x11xbf16>,
    %c0_13 = arith.constant 0 : index
    %c0_14 = arith.constant 0 : index
    %15 = vector.load %arg3[%c0_13, %c0_14] : memref<8x64xbf16, #tpu.memory_space<vmem>>, vector<8x64xbf16>
    %c0_15 = arith.constant 0 : index
    %c0_16 = arith.constant 0 : index
    %16 = vector.load %arg13[%c0_15, %c0_16] : memref<64x256xbf16, #tpu.memory_space<vmem>>, vector<64x256xbf16>
    %cst_17 = arith.constant dense<0.000000e+00> : vector<8x256xf32>
    %17 = tpu.matmul %15, %16, %cst_17 {dimension_numbers = #tpu.dot_dimension_numbers<[1], [0], [0], [1], [0, 0, 1, 1], [], []>} : vector<8x64xbf16>, vector<64x256xbf16>, vector<8x256xf32> -> vector<8x256xf32>
    %c0_18 = arith.constant 0 : index
    %c0_19 = arith.constant 0 : index
    %18 = vector.load %arg4[%c0_18, %c0_19] : memref<8x1xf32, #tpu.memory_space<vmem>>, vector<8x1xf32>
    %c0_20 = arith.constant 0 : index
    %c0_21 = arith.constant 0 : index
    %19 = vector.load %arg5[%c0_20, %c0_21] : memref<8x1xf32, #tpu.memory_space<vmem>>, vector<8x1xf32>
    %20 = vector.broadcast %0 : vector<1x256xf32> to vector<8x256xf32>
    %21 = arith.mulf %17, %20 : vector<8x256xf32>
    %cst_22 = arith.constant dense<0.000000e+00> : vector<8xf32>
    %22 = vector.multi_reduction <add>, %21, %cst_22 [1] : vector<8x256xf32> to vector<8xf32>
    %23 = vector.shape_cast %22 : vector<8xf32> to vector<8x1xf32>
    %24 = arith.mulf %21, %17 : vector<8x256xf32>
    %cst_23 = arith.constant dense<0.000000e+00> : vector<8xf32>
    %25 = vector.multi_reduction <add>, %24, %cst_23 [1] : vector<8x256xf32> to vector<8xf32>
    %26 = vector.shape_cast %25 : vector<8xf32> to vector<8x1xf32>
    %cst_24 = arith.constant 7.812500e-03 : f32
    %27 = vector.broadcast %cst_24 : f32 to vector<8x1xf32>
    %28 = arith.mulf %23, %27 : vector<8x1xf32>
    %cst_25 = arith.constant 7.812500e-03 : f32
    %29 = vector.broadcast %cst_25 : f32 to vector<8x1xf32>
    %30 = arith.mulf %26, %29 : vector<8x1xf32>
    %31 = arith.mulf %28, %28 : vector<8x1xf32>
    %32 = arith.subf %30, %31 : vector<8x1xf32>
    %33 = vector.broadcast %28 : vector<8x1xf32> to vector<8x256xf32>
    %34 = arith.subf %17, %33 : vector<8x256xf32>
    %cst_26 = arith.constant 9.99999974E-6 : f32
    %35 = vector.broadcast %cst_26 : f32 to vector<8x1xf32>
    %36 = arith.addf %32, %35 : vector<8x1xf32>
    %37 = math.rsqrt %36 : vector<8x1xf32>
    %38 = vector.broadcast %37 : vector<8x1xf32> to vector<8x256xf32>
    %39 = arith.mulf %34, %38 : vector<8x256xf32>
    %40 = vector.broadcast %18 : vector<8x1xf32> to vector<8x256xf32>
    %41 = arith.mulf %39, %40 : vector<8x256xf32>
    %42 = vector.broadcast %19 : vector<8x1xf32> to vector<8x256xf32>
    %43 = arith.addf %41, %42 : vector<8x256xf32>
    %cst_27 = arith.constant 0.000000e+00 : f32
    %44 = vector.broadcast %cst_27 : f32 to vector<8x256xf32>
    %45 = arith.maximumf %43, %44 : vector<8x256xf32>
    %46 = vector.broadcast %0 : vector<1x256xf32> to vector<8x256xf32>
    %47 = arith.mulf %45, %46 : vector<8x256xf32>
    %48 = arith.truncf %47 : vector<8x256xf32> to vector<8x256xbf16>
    %cst_28 = arith.constant 0.000000e+00 : bf16
    %49 = vector.broadcast %cst_28 : bf16 to vector<8x11xbf16>
    %c0_29 = arith.constant 0 : index
    %c0_30 = arith.constant 0 : index
    %50 = vector.load %arg14[%c0_29, %c0_30] : memref<80x256xbf16, #tpu.memory_space<vmem>>, vector<8x11xbf16>
    tpu.vector_store %arg14[%c0_29, %c0_30], %49 {strides = array<i32>} : memref<80x256xbf16, #tpu.memory_space<vmem>>, vector<8x11xbf16>,
    %51 = vector.extract_strided_slice %48 {offsets = [0, 0], sizes = [8, 245], strides = [1, 1]} : vector<8x256xbf16> to vector<8x245xbf16>
    %c0_31 = arith.constant 0 : index
    %c11 = arith.constant 11 : index
    %52 = vector.load %arg14[%c0_31, %c11] : memref<80x256xbf16, #tpu.memory_space<vmem>>, vector<8x245xbf16>
    tpu.vector_store %arg14[%c0_31, %c11], %51 {strides = array<i32>} : memref<80x256xbf16, #tpu.memory_space<vmem>>, vector<8x245xbf16>,
    %cst_32 = arith.constant 0.000000e+00 : bf16
    %53 = vector.broadcast %cst_32 : bf16 to vector<8x10xbf16>
    %c8 = arith.constant 8 : index
    %c0_33 = arith.constant 0 : index
    %54 = vector.load %arg14[%c8, %c0_33] : memref<80x256xbf16, #tpu.memory_space<vmem>>, vector<8x10xbf16>
    tpu.vector_store %arg14[%c8, %c0_33], %53 {strides = array<i32>} : memref<80x256xbf16, #tpu.memory_space<vmem>>, vector<8x10xbf16>,
    %55 = vector.extract_strided_slice %48 {offsets = [0, 0], sizes = [8, 246], strides = [1, 1]} : vector<8x256xbf16> to vector<8x246xbf16>
    %c8_34 = arith.constant 8 : index
    %c10 = arith.constant 10 : index
    %56 = vector.load %arg14[%c8_34, %c10] : memref<80x256xbf16, #tpu.memory_space<vmem>>, vector<8x246xbf16>
    tpu.vector_store %arg14[%c8_34, %c10], %55 {strides = array<i32>} : memref<80x256xbf16, #tpu.memory_space<vmem>>, vector<8x246xbf16>,
    %cst_35 = arith.constant 0.000000e+00 : bf16
    %57 = vector.broadcast %cst_35 : bf16 to vector<8x9xbf16>
    %c16_36 = arith.constant 16 : index
    %c0_37 = arith.constant 0 : index
    %58 = vector.load %arg14[%c16_36, %c0_37] : memref<80x256xbf16, #tpu.memory_space<vmem>>, vector<8x9xbf16>
    tpu.vector_store %arg14[%c16_36, %c0_37], %57 {strides = array<i32>} : memref<80x256xbf16, #tpu.memory_space<vmem>>, vector<8x9xbf16>,
    %59 = vector.extract_strided_slice %48 {offsets = [0, 0], sizes = [8, 247], strides = [1, 1]} : vector<8x256xbf16> to vector<8x247xbf16>
    %c16_38 = arith.constant 16 : index
    %c9 = arith.constant 9 : index
    %60 = vector.load %arg14[%c16_38, %c9] : memref<80x256xbf16, #tpu.memory_space<vmem>>, vector<8x247xbf16>
    tpu.vector_store %arg14[%c16_38, %c9], %59 {strides = array<i32>} : memref<80x256xbf16, #tpu.memory_space<vmem>>, vector<8x247xbf16>,
    %cst_39 = arith.constant 0.000000e+00 : bf16
    %61 = vector.broadcast %cst_39 : bf16 to vector<8x1xbf16>
    %c24 = arith.constant 24 : index
    %c0_40 = arith.constant 0 : index
    %62 = vector.load %arg14[%c24, %c0_40] : memref<80x256xbf16, #tpu.memory_space<vmem>>, vector<8x1xbf16>
    tpu.vector_store %arg14[%c24, %c0_40], %61 {strides = array<i32>} : memref<80x256xbf16, #tpu.memory_space<vmem>>, vector<8x1xbf16>,
    %63 = vector.extract_strided_slice %48 {offsets = [0, 0], sizes = [8, 255], strides = [1, 1]} : vector<8x256xbf16> to vector<8x255xbf16>
    %c24_41 = arith.constant 24 : index
    %c1 = arith.constant 1 : index
    %64 = vector.load %arg14[%c24_41, %c1] : memref<80x256xbf16, #tpu.memory_space<vmem>>, vector<8x255xbf16>
    tpu.vector_store %arg14[%c24_41, %c1], %63 {strides = array<i32>} : memref<80x256xbf16, #tpu.memory_space<vmem>>, vector<8x255xbf16>,
    %c32_42 = arith.constant 32 : index
    %c0_43 = arith.constant 0 : index
    %65 = vector.load %arg14[%c32_42, %c0_43] : memref<80x256xbf16, #tpu.memory_space<vmem>>, vector<8x256xbf16>
    tpu.vector_store %arg14[%c32_42, %c0_43], %48 {strides = array<i32>} : memref<80x256xbf16, #tpu.memory_space<vmem>>, vector<8x256xbf16>,
    %66 = vector.extract_strided_slice %48 {offsets = [0, 1], sizes = [8, 255], strides = [1, 1]} : vector<8x256xbf16> to vector<8x255xbf16>
    %c40 = arith.constant 40 : index
    %c0_44 = arith.constant 0 : index
    %67 = vector.load %arg14[%c40, %c0_44] : memref<80x256xbf16, #tpu.memory_space<vmem>>, vector<8x255xbf16>
    tpu.vector_store %arg14[%c40, %c0_44], %66 {strides = array<i32>} : memref<80x256xbf16, #tpu.memory_space<vmem>>, vector<8x255xbf16>,
    %cst_45 = arith.constant 0.000000e+00 : bf16
    %68 = vector.broadcast %cst_45 : bf16 to vector<8x1xbf16>
    %c40_46 = arith.constant 40 : index
    %c255_47 = arith.constant 255 : index
    %69 = vector.load %arg14[%c40_46, %c255_47] : memref<80x256xbf16, #tpu.memory_space<vmem>>, vector<8x1xbf16>
    tpu.vector_store %arg14[%c40_46, %c255_47], %68 {strides = array<i32>} : memref<80x256xbf16, #tpu.memory_space<vmem>>, vector<8x1xbf16>,
    %70 = vector.extract_strided_slice %48 {offsets = [0, 9], sizes = [8, 247], strides = [1, 1]} : vector<8x256xbf16> to vector<8x247xbf16>
    %c48_48 = arith.constant 48 : index
    %c0_49 = arith.constant 0 : index
    %71 = vector.load %arg14[%c48_48, %c0_49] : memref<80x256xbf16, #tpu.memory_space<vmem>>, vector<8x247xbf16>
    tpu.vector_store %arg14[%c48_48, %c0_49], %70 {strides = array<i32>} : memref<80x256xbf16, #tpu.memory_space<vmem>>, vector<8x247xbf16>,
    %cst_50 = arith.constant 0.000000e+00 : bf16
    %72 = vector.broadcast %cst_50 : bf16 to vector<8x9xbf16>
    %c48_51 = arith.constant 48 : index
    %c247 = arith.constant 247 : index
    %73 = vector.load %arg14[%c48_51, %c247] : memref<80x256xbf16, #tpu.memory_space<vmem>>, vector<8x9xbf16>
    tpu.vector_store %arg14[%c48_51, %c247], %72 {strides = array<i32>} : memref<80x256xbf16, #tpu.memory_space<vmem>>, vector<8x9xbf16>,
    %74 = vector.extract_strided_slice %48 {offsets = [0, 10], sizes = [8, 246], strides = [1, 1]} : vector<8x256xbf16> to vector<8x246xbf16>
    %c56 = arith.constant 56 : index
    %c0_52 = arith.constant 0 : index
    %75 = vector.load %arg14[%c56, %c0_52] : memref<80x256xbf16, #tpu.memory_space<vmem>>, vector<8x246xbf16>
    tpu.vector_store %arg14[%c56, %c0_52], %74 {strides = array<i32>} : memref<80x256xbf16, #tpu.memory_space<vmem>>, vector<8x246xbf16>,
    %cst_53 = arith.constant 0.000000e+00 : bf16
    %76 = vector.broadcast %cst_53 : bf16 to vector<8x10xbf16>
    %c56_54 = arith.constant 56 : index
    %c246_55 = arith.constant 246 : index
    %77 = vector.load %arg14[%c56_54, %c246_55] : memref<80x256xbf16, #tpu.memory_space<vmem>>, vector<8x10xbf16>
    tpu.vector_store %arg14[%c56_54, %c246_55], %76 {strides = array<i32>} : memref<80x256xbf16, #tpu.memory_space<vmem>>, vector<8x10xbf16>,
    %78 = vector.extract_strided_slice %48 {offsets = [0, 11], sizes = [8, 245], strides = [1, 1]} : vector<8x256xbf16> to vector<8x245xbf16>
    %c64 = arith.constant 64 : index
    %c0_56 = arith.constant 0 : index
    %79 = vector.load %arg14[%c64, %c0_56] : memref<80x256xbf16, #tpu.memory_space<vmem>>, vector<8x245xbf16>
    tpu.vector_store %arg14[%c64, %c0_56], %78 {strides = array<i32>} : memref<80x256xbf16, #tpu.memory_space<vmem>>, vector<8x245xbf16>,
    %cst_57 = arith.constant 0.000000e+00 : bf16
    %80 = vector.broadcast %cst_57 : bf16 to vector<8x11xbf16>
    %c64_58 = arith.constant 64 : index
    %c245_59 = arith.constant 245 : index
    %81 = vector.load %arg14[%c64_58, %c245_59] : memref<80x256xbf16, #tpu.memory_space<vmem>>, vector<8x11xbf16>
    tpu.vector_store %arg14[%c64_58, %c245_59], %80 {strides = array<i32>} : memref<80x256xbf16, #tpu.memory_space<vmem>>, vector<8x11xbf16>,
    %cst_60 = arith.constant 0.000000e+00 : bf16
    %82 = vector.broadcast %cst_60 : bf16 to vector<8x256xbf16>
    %c72 = arith.constant 72 : index
    %c0_61 = arith.constant 0 : index
    %83 = vector.load %arg14[%c72, %c0_61] : memref<80x256xbf16, #tpu.memory_space<vmem>>, vector<8x256xbf16>
    tpu.vector_store %arg14[%c72, %c0_61], %82 {strides = array<i32>} : memref<80x256xbf16, #tpu.memory_space<vmem>>, vector<8x256xbf16>,
    %c0_62 = arith.constant 0 : index
    %c0_63 = arith.constant 0 : index
    %84 = vector.load %arg6[%c0_62, %c0_63] : memref<8x80xbf16, #tpu.memory_space<vmem>>, vector<8x80xbf16>
    %c0_64 = arith.constant 0 : index
    %c0_65 = arith.constant 0 : index
    %85 = vector.load %arg14[%c0_64, %c0_65] : memref<80x256xbf16, #tpu.memory_space<vmem>>, vector<80x256xbf16>
    %cst_66 = arith.constant dense<0.000000e+00> : vector<8x256xf32>
    %86 = tpu.matmul %84, %85, %cst_66 {dimension_numbers = #tpu.dot_dimension_numbers<[1], [0], [0], [1], [0, 0, 1, 1], [], []>} : vector<8x80xbf16>, vector<80x256xbf16>, vector<8x256xf32> -> vector<8x256xf32>
    %c0_67 = arith.constant 0 : index
    %c0_68 = arith.constant 0 : index
    %87 = vector.load %arg7[%c0_67, %c0_68] : memref<8x1xf32, #tpu.memory_space<vmem>>, vector<8x1xf32>
    %c0_69 = arith.constant 0 : index
    %c0_70 = arith.constant 0 : index
    %88 = vector.load %arg8[%c0_69, %c0_70] : memref<8x1xf32, #tpu.memory_space<vmem>>, vector<8x1xf32>
    %89 = vector.broadcast %0 : vector<1x256xf32> to vector<8x256xf32>
    %90 = arith.mulf %86, %89 : vector<8x256xf32>
    %cst_71 = arith.constant dense<0.000000e+00> : vector<8xf32>
    %91 = vector.multi_reduction <add>, %90, %cst_71 [1] : vector<8x256xf32> to vector<8xf32>
    %92 = vector.shape_cast %91 : vector<8xf32> to vector<8x1xf32>
    %93 = arith.mulf %90, %86 : vector<8x256xf32>
    %cst_72 = arith.constant dense<0.000000e+00> : vector<8xf32>
    %94 = vector.multi_reduction <add>, %93, %cst_72 [1] : vector<8x256xf32> to vector<8xf32>
    %95 = vector.shape_cast %94 : vector<8xf32> to vector<8x1xf32>
    %cst_73 = arith.constant 7.812500e-03 : f32
    %96 = vector.broadcast %cst_73 : f32 to vector<8x1xf32>
    %97 = arith.mulf %92, %96 : vector<8x1xf32>
    %cst_74 = arith.constant 7.812500e-03 : f32
    %98 = vector.broadcast %cst_74 : f32 to vector<8x1xf32>
    %99 = arith.mulf %95, %98 : vector<8x1xf32>
    %100 = arith.mulf %97, %97 : vector<8x1xf32>
    %101 = arith.subf %99, %100 : vector<8x1xf32>
    %102 = vector.broadcast %97 : vector<8x1xf32> to vector<8x256xf32>
    %103 = arith.subf %86, %102 : vector<8x256xf32>
    %cst_75 = arith.constant 9.99999974E-6 : f32
    %104 = vector.broadcast %cst_75 : f32 to vector<8x1xf32>
    %105 = arith.addf %101, %104 : vector<8x1xf32>
    %106 = math.rsqrt %105 : vector<8x1xf32>
    %107 = vector.broadcast %106 : vector<8x1xf32> to vector<8x256xf32>
    %108 = arith.mulf %103, %107 : vector<8x256xf32>
    %109 = vector.broadcast %87 : vector<8x1xf32> to vector<8x256xf32>
    %110 = arith.mulf %108, %109 : vector<8x256xf32>
    %111 = vector.broadcast %88 : vector<8x1xf32> to vector<8x256xf32>
    %112 = arith.addf %110, %111 : vector<8x256xf32>
    %c0_76 = arith.constant 0 : index
    %c0_77 = arith.constant 0 : index
    %113 = vector.load %arg9[%c0_76, %c0_77] : memref<8x16xbf16, #tpu.memory_space<vmem>>, vector<8x16xbf16>
    %cst_78 = arith.constant dense<0.000000e+00> : vector<8x256xf32>
    %114 = tpu.matmul %113, %1, %cst_78 {dimension_numbers = #tpu.dot_dimension_numbers<[1], [0], [0], [1], [0, 0, 1, 1], [], []>} : vector<8x16xbf16>, vector<16x256xbf16>, vector<8x256xf32> -> vector<8x256xf32>
    %c0_79 = arith.constant 0 : index
    %c0_80 = arith.constant 0 : index
    %115 = vector.load %arg10[%c0_79, %c0_80] : memref<8x1xf32, #tpu.memory_space<vmem>>, vector<8x1xf32>
    %c0_81 = arith.constant 0 : index
    %c0_82 = arith.constant 0 : index
    %116 = vector.load %arg11[%c0_81, %c0_82] : memref<8x1xf32, #tpu.memory_space<vmem>>, vector<8x1xf32>
    %117 = vector.broadcast %0 : vector<1x256xf32> to vector<8x256xf32>
    %118 = arith.mulf %114, %117 : vector<8x256xf32>
    %cst_83 = arith.constant dense<0.000000e+00> : vector<8xf32>
    %119 = vector.multi_reduction <add>, %118, %cst_83 [1] : vector<8x256xf32> to vector<8xf32>
    %120 = vector.shape_cast %119 : vector<8xf32> to vector<8x1xf32>
    %121 = arith.mulf %118, %114 : vector<8x256xf32>
    %cst_84 = arith.constant dense<0.000000e+00> : vector<8xf32>
    %122 = vector.multi_reduction <add>, %121, %cst_84 [1] : vector<8x256xf32> to vector<8xf32>
    %123 = vector.shape_cast %122 : vector<8xf32> to vector<8x1xf32>
    %cst_85 = arith.constant 7.812500e-03 : f32
    %124 = vector.broadcast %cst_85 : f32 to vector<8x1xf32>
    %125 = arith.mulf %120, %124 : vector<8x1xf32>
    %cst_86 = arith.constant 7.812500e-03 : f32
    %126 = vector.broadcast %cst_86 : f32 to vector<8x1xf32>
    %127 = arith.mulf %123, %126 : vector<8x1xf32>
    %128 = arith.mulf %125, %125 : vector<8x1xf32>
    %129 = arith.subf %127, %128 : vector<8x1xf32>
    %130 = vector.broadcast %125 : vector<8x1xf32> to vector<8x256xf32>
    %131 = arith.subf %114, %130 : vector<8x256xf32>
    %cst_87 = arith.constant 9.99999974E-6 : f32
    %132 = vector.broadcast %cst_87 : f32 to vector<8x1xf32>
    %133 = arith.addf %129, %132 : vector<8x1xf32>
    %134 = math.rsqrt %133 : vector<8x1xf32>
    %135 = vector.broadcast %134 : vector<8x1xf32> to vector<8x256xf32>
    %136 = arith.mulf %131, %135 : vector<8x256xf32>
    %137 = vector.broadcast %115 : vector<8x1xf32> to vector<8x256xf32>
    %138 = arith.mulf %136, %137 : vector<8x256xf32>
    %139 = vector.broadcast %116 : vector<8x1xf32> to vector<8x256xf32>
    %140 = arith.addf %138, %139 : vector<8x256xf32>
    %141 = arith.addf %112, %140 : vector<8x256xf32>
    %cst_88 = arith.constant 0.000000e+00 : f32
    %142 = vector.broadcast %cst_88 : f32 to vector<8x256xf32>
    %143 = arith.maximumf %141, %142 : vector<8x256xf32>
    %c0_89 = arith.constant 0 : index
    %c0_90 = arith.constant 0 : index
    %144 = vector.load %arg12[%c0_89, %c0_90] : memref<8x256xf32, #tpu.memory_space<vmem>>, vector<8x256xf32>
    tpu.vector_store %arg12[%c0_89, %c0_90], %143 {strides = array<i32>} : memref<8x256xf32, #tpu.memory_space<vmem>>, vector<8x256xf32>,
    return
  }
  func.func @transform_0(%arg0: i32) -> (i32, i32) {
    %c0_i32 = arith.constant 0 : i32
    %c0_i32_0 = arith.constant 0 : i32
    %c0_i32_1 = arith.constant 0 : i32
    return %c0_i32, %c0_i32_0 : i32, i32
  }
  func.func @transform_1(%arg0: i32) -> (i32, i32) {
    %c0_i32 = arith.constant 0 : i32
    %c0_i32_0 = arith.constant 0 : i32
    %c0_i32_1 = arith.constant 0 : i32
    return %c0_i32, %c0_i32_0 : i32, i32
  }
  func.func @transform_2(%arg0: i32) -> (i32, i32) {
    %c0_i32 = arith.constant 0 : i32
    %c0_i32_0 = arith.constant 0 : i32
    %c0_i32_1 = arith.constant 0 : i32
    return %c0_i32, %c0_i32_0 : i32, i32
  }
  func.func @transform_3(%arg0: i32) -> (i32, i32) {
    %c0_i32 = arith.constant 0 : i32
    %c0_i32_0 = arith.constant 0 : i32
    %c0_i32_1 = arith.constant 0 : i32
    return %c0_i32, %c0_i32_0 : i32, i32
  }
  func.func @transform_4(%arg0: i32) -> (i32, i32) {
    %c0_i32 = arith.constant 0 : i32
    %c0_i32_0 = arith.constant 0 : i32
    %c0_i32_1 = arith.constant 0 : i32
    return %c0_i32, %c0_i32_0 : i32, i32
  }
  func.func @transform_5(%arg0: i32) -> (i32, i32) {
    %c0_i32 = arith.constant 0 : i32
    %c0_i32_0 = arith.constant 0 : i32
    %c0_i32_1 = arith.constant 0 : i32
    return %c0_i32, %c0_i32_0 : i32, i32
  }
  func.func @transform_6(%arg0: i32) -> (i32, i32) {
    %c0_i32 = arith.constant 0 : i32
    %c0_i32_0 = arith.constant 0 : i32
    %c0_i32_1 = arith.constant 0 : i32
    return %c0_i32, %c0_i32_0 : i32, i32
  }
  func.func @transform_7(%arg0: i32) -> (i32, i32) {
    %c0_i32 = arith.constant 0 : i32
    %c0_i32_0 = arith.constant 0 : i32
    %c0_i32_1 = arith.constant 0 : i32
    return %c0_i32, %c0_i32_0 : i32, i32
  }
  func.func @transform_8(%arg0: i32) -> (i32, i32) {
    %c0_i32 = arith.constant 0 : i32
    %c0_i32_0 = arith.constant 0 : i32
    %c0_i32_1 = arith.constant 0 : i32
    return %c0_i32, %c0_i32_0 : i32, i32
  }
  func.func @transform_9(%arg0: i32) -> (i32, i32) {
    %c0_i32 = arith.constant 0 : i32
    %c0_i32_0 = arith.constant 0 : i32
    %c0_i32_1 = arith.constant 0 : i32
    return %c0_i32, %c0_i32_0 : i32, i32
  }
  func.func @transform_10(%arg0: i32) -> (i32, i32) {
    %c0_i32 = arith.constant 0 : i32
    %c0_i32_0 = arith.constant 0 : i32
    %c0_i32_1 = arith.constant 0 : i32
    return %c0_i32, %c0_i32_0 : i32, i32
  }
  func.func @transform_11(%arg0: i32) -> (i32, i32) {
    %c0_i32 = arith.constant 0 : i32
    %c0_i32_0 = arith.constant 0 : i32
    %c0_i32_1 = arith.constant 0 : i32
    return %c0_i32, %c0_i32_0 : i32, i32
  }
}

</mosaic_0001>

<bundles_post_ra>
// kernel: _forward.1
= control target key start
LH: loop header
LB: loop body
LE: loop exit
PB: predicated region body
PF: predicated region fallthrough
CT: control target
= control target key end

     0   :  { %v518_v1 = vmov 0   ;;  %s519_s21 = smov 118   ;;  %s520_s22 = smov 127   ;;  %vm71_vm0 = vcmask 965632   ;;  %vm58_vm1 = vcmask 1039360   ;;  %vm78_vm2 = vcmask 1048496   ;;  %s690_s0 = inlined_call_operand.vmem [shape: bf16[16,256], index: 0, kind: input, shape index: {}]   ;;  %s691_s2 = inlined_call_operand.vmem [shape: bf16[8,64], index: 2, kind: input, shape index: {}]   ;;  %s692_s8 = inlined_call_operand.vmem [shape: bf16[8,16], index: 8, kind: input, shape index: {}]   ;;  %s693_s1 = inlined_call_operand.vmem [shape: f32[1,256], index: 1, kind: input, shape index: {}]   ;;  %s694_s4 = inlined_call_operand.vmem [shape: f32[8,1], index: 4, kind: input, shape index: {}]   ;;  %s695_s3 = inlined_call_operand.vmem [shape: f32[8,1], index: 3, kind: input, shape index: {}]   ;;  %s696_s6 = inlined_call_operand.vmem [shape: f32[8,1], index: 6, kind: input, shape index: {}]   ;;  %s697_s7 = inlined_call_operand.vmem [shape: f32[8,1], index: 7, kind: input, shape index: {}]   ;;  %s698_s10 = inlined_call_operand.vmem [shape: f32[8,1], index: 10, kind: input, shape index: {}]   ;;  %s699_s5 = inlined_call_operand.vmem [shape: bf16[8,80], index: 5, kind: input, shape index: {}]   ;;  %s700_s9 = inlined_call_operand.vmem [shape: f32[8,1], index: 9, kind: input, shape index: {}]   ;;  %s701_s11 = inlined_call_operand.vmem [shape: f32[8,256], index: 11, kind: output, shape index: {}]  }
   0x1   :  { %v509_v0 = vld [vmem:[%s690_s0 + $0x4] ss:$8 sps:$4 sm:$0xff]   ;;  %307 = vst [vmem:[#allocation3 + $0x40] sm:$0xf0] %v518_v1  ;;  %308 = vst [vmem:[#allocation3 + $0x48] sm:$0xf0] %v518_v1  ;;  %138 = vmatprep.mubr.bf16.mxu0 %v518_v1  ;;  %507 = vset.pattern.permute.xlu0 %v518_v1  ;;  %v150_v17 = vlaneseq }
   0x2   :  { %v511_v2 = vld [vmem:[%s690_s0] ss:$8 sps:$4 sm:$0xff]   ;;  %508 = vset.pattern.permute.xlu1 %v518_v1  ;;  %356 = vmatprep.mubr.bf16.mxu1 %v518_v1  ;;  %s521_s23 = smov 117   ;;  %vm65_vm3 = vcmask 1048568   ;;  %vm84_vm4 = vcmask 957440   ;;  %vm91_vm5 = vcmask 1048488  }
   0x3   :  { %69 = vrot.lane.b32.xlu1 %v509_v0, %s519_s21  ;;  %56 = vrot.lane.b32.xlu0 %v509_v0, %s520_s22  ;;  %v93_v15 = vld [vmem:[%s691_s2] sm:$0xf]  ;;  %vm102_vm6 = vcmask 523264   ;;  %vm402_vm7 = vcmask 130048   ;;  %v151_v18 = vshrl.u32 %v150_v17, 7  ;;  %vm200_vm8 = vcmask 84992  }
   0x4   :  { %106 = vmatprep.subr.bf16.mxu0 %v509_v0  ;;  %v401_v16 = vld [vmem:[%s692_s8] sm:$0xf]  ;;  %201 = vst.msk [vmem:[#allocation3] sm:$0xf] %vm200_vm8, %v518_v1  ;;  %vm243_vm9 = vcmask 7172   ;;  %vm230_vm10 = vcmask 68608  }
   0x5   :  { %107 = vmatpush1.bf16.msra.mxu0 %v511_v2  ;;  %v152_v19 = vsub.s32 0, %v151_v18  ;;  %v39_v20 = vld [vmem:[%s693_s1] sm:$0x3]  ;;  %v156_v21 = vsub.s32 1, %v151_v18  ;;  %244 = vst.msk [vmem:[#allocation3 + $0x10] sm:$0xf0] %vm243_vm9, %v518_v1 }
   0x6   :  { %v148_v34 = vld [vmem:[%s694_s4] sm:$0xff]  ;;  %231 = vst.msk [vmem:[#allocation3 + $0x10] sm:$0xf] %vm230_vm10, %v518_v1  ;;  %s523_s4 = smov 11   ;;  %vm215_vm11 = vcmask 80900   ;;  %s524_s30 = smov 1  }
   0x7   :  { %67 = vrot.lane.b32.xlu1 %v511_v2, %s519_s21  ;;  %54 = vrot.lane.b32.xlu0 %v511_v2, %s520_s22  ;;  %v624_v22 = vrot.slane %v39_v20, %v152_v19  ;;  %v626_v23 = vrot.slane %v39_v20, %v156_v21  ;;  %v147_v35 = vld [vmem:[%s695_s3] sm:$0xff]  ;;  %s522_s3 = smov 119   ;;  %216 = vst.msk [vmem:[#allocation3] sm:$0xf0] %vm215_vm11, %v518_v1  ;;  %s525_s12 = smov 9   ;;  %vm279_vm12 = vcmask 969728  }
   0x8   :  { %s526_s13 = smov 10   ;;  %vm212_vm13 = vcmask 1043544   ;;  %vm281_vm14 = vcmask 1044408   ;;  %vm208_vm15 = vcmask 89088   ;;  %vm274_vm8 = vcmask 973824  }
   0x9   :  { %vm303_vm9 = vcmask 953344   ;;  %vm227_vm10 = vcmask 1047636   ;;  %vm305_vm11 = vcmask 1044392  }
   0xb   :  { %80 = vrot.lane.b32.xlu1 %v511_v2, %s521_s23  ;;  %82 = vrot.lane.b32.xlu0 %v509_v0, %s521_s23 }
  0x75   :  { %v70_v3 = vpop.permute.xlu1 %69  ;;  %v57_v4 = vpop.permute.xlu0 %56 }
  0x76   :  { %77 = vst.msk [vmem:[#allocation2 + $0x28] sm:$0xff] %vm71_vm0, %v70_v3 }
  0x77   :  { %64 = vst.msk [vmem:[#allocation2 + $0x18] sm:$0xff] %vm58_vm1, %v57_v4 }
  0x78   :  { %79 = vst.msk [vmem:[#allocation2 + $0x28] sm:$0xff] %vm78_vm2, %v518_v1  ;;  %vm253_vm2 = vcmask 1047564  }
  0x79   :  { %66 = vst.msk [vmem:[#allocation2 + $0x18] sm:$0xff] %vm65_vm3, %v518_v1  ;;  %v68_v5 = vpop.permute.xlu1 %67  ;;  %v55_v6 = vpop.permute.xlu0 %54  ;;  %vm240_vm3 = vcmask 1043528  }
  0x7a   :  { %v72_v7 = vsel %vm71_vm0, %v68_v5, %v70_v3  ;;  %v59_v8 = vsel %vm58_vm1, %v55_v6, %v57_v4 }
  0x7d   :  { %v81_v9 = vpop.permute.xlu1 %80  ;;  %v83_v10 = vpop.permute.xlu0 %82 }
  0x7e   :  { %v85_v11 = vsel %vm84_vm4, %v81_v9, %v83_v10  ;;  %90 = vst.msk [vmem:[#allocation2 + $0x38] sm:$0xff] %vm84_vm4, %v83_v10  ;;  %v365_v9 = vld [vmem:[%s696_s6] sm:$0xff] }
  0x7f   :  { %v99_v13 = vld [vmem:[#allocation2 + $0x28] sm:$0xff]  ;;  %92 = vst.msk [vmem:[#allocation2 + $0x38] sm:$0xff] %vm91_vm5, %v518_v1  ;;  %v366_v10 = vld [vmem:[%s697_s7] sm:$0xff]  ;;  %vm266_vm5 = vcmask 1039364  }
  0x80   :  { %v97_v12 = vld [vmem:[#allocation2 + $0x18] sm:$0xff] }
  0x81   :  { %108 = vmatprep.subr.bf16.mxu0 %v97_v12 }
  0x82   :  { %109 = vmatpush1.bf16.msra.mxu0 %v59_v8 }
  0x83   :  { %110 = vmatprep.subr.bf16.mxu0 %v99_v13 }
  0x86   :  { %111 = vmatpush1.bf16.msra.mxu0 %v72_v7  ;;  %v101_v14 = vld [vmem:[#allocation2 + $0x38] sm:$0xff] }
  0x87   :  { %112 = vmatprep.subr.bf16.mxu0 %v101_v14 }
  0x8a   :  { %113 = vmatpush1.bf16.msra.mxu0 %v85_v11  ;;  %v448_v11 = vld [vmem:[%s698_s10] sm:$0xff] }
  0x8b   :  { %406 = vmatprep.subr.bf16.mxu0 %v509_v0 }
  0x8d   :  { %495 = vmatmul.mubr.msk.bf16.vlgmr.msra.gmra.mrb[0].mxu0 %vm102_vm6, %v93_v15  ;;  %vm268_vm6 = vcmask 1048572  }
  0x8e   :  { %407 = vmatpush1.bf16.msra.mxu0 %v511_v2  ;;  %438 = vmatprep.mubr.bf16.mxu0 %v518_v1 }
  0x95   :  { %497 = vmatmul.mubr.msk.bf16.vlgmr.msra.gmra.mrb[4].mxu0 %vm402_vm7, %v401_v16  ;;  %vm236_vm7 = vcmask 72704  }
 0x160   :  { %v140_v24 = vpop.f32.mrb[0].mxu0 }
 0x161   :  { %v142_v25 = vpop.f32.mrb[1].mxu0  ;;  %v160_v26 = vmul.f32 %v624_v22, %v140_v24 }
 0x162   :  { %v144_v27 = vpop.f32.mrb[2].mxu0  ;;  %v161_v28 = vmul.f32 %v626_v23, %v142_v25 }
 0x163   :  { %v145_v29 = vpop.f32.mrb[3].mxu0  ;;  %v165_v30 = vmul.f32 %v160_v26, %v140_v24 }
 0x164   :  { %v162_v31 = vadd.f32 %v161_v28, %v160_v26  ;;  %v166_v32 = vmul.f32 %v161_v28, %v142_v25 }
 0x166   :  { %163 = vadd.xlane.f32.xlu0 %v162_v31  ;;  %v167_v33 = vadd.f32 %v166_v32, %v165_v30 }
 0x168   :  { %168 = vadd.xlane.f32.xlu1 %v167_v33  ;;  %v636_v36 = vpop.f32.mrb[4].mxu0 }
 0x169   :  { %v638_v37 = vpop.f32.mrb[5].mxu0  ;;  %v449_v38 = vmul.f32 %v636_v36, %v624_v22 }
 0x16a   :  { %v450_v39 = vmul.f32 %v638_v37, %v626_v23  ;;  %v444_v40 = vpop.f32.mrb[6].mxu0 }
 0x16b   :  { %v445_v41 = vpop.f32.mrb[7].mxu0  ;;  %v454_v6 = vmul.f32 %v449_v38, %v636_v36 }
 0x16c   :  { %v451_v42 = vadd.f32 %v450_v39, %v449_v38  ;;  %v455_v7 = vmul.f32 %v450_v39, %v638_v37 }
 0x16e   :  { %v456_v8 = vadd.f32 %v455_v7, %v454_v6 }
 0x179   :  { %189 = vperm.xlu1 %508, %v148_v34  }
 0x17c   :  { %182 = vperm.xlu0 %507, %v147_v35  }
 0x1f3   :  { %v164_v43 = vpop.xlane.xlu0 %163 }
 0x1f4   :  { %v170_v44 = vmul.f32 0.0078125, %v164_v43 }
 0x1f5   :  { %v169_v45 = vpop.xlane.xlu1 %168 }
 0x1f6   :  { %v171_v46 = vmul.f32 0.0078125, %v169_v45  ;;  %v172_v47 = vmul.f32 %v170_v44, %v170_v44  ;;  %v174_v50 = vsub.f32 %v140_v24, %v170_v44  ;;  %v175_v51 = vsub.f32 %v142_v25, %v170_v44 }
 0x1f8   :  { %v173_v48 = vsub.f32 %v171_v46, %v172_v47 }
 0x1f9   :  { %v190_v56 = vpop.permute.xlu1 %189 }
 0x1fa   :  { %v176_v49 = vadd.f32 1e-05, %v173_v48 }
 0x1fb   :  { %v183_v53 = vpop.permute.xlu0 %182 }
 0x1fc   :  { %512 = vrsqrt.f32 %v176_v49  ;;  %v309_v49 = vld [vmem:[%s699_s5] sm:$0xf] }
 0x206   :  { %v513_v52 = vpop.eup %512 }
 0x207   :  { %v178_v54 = vmul.f32 %v513_v52, %v174_v50  ;;  %v179_v55 = vmul.f32 %v513_v52, %v175_v51 }
 0x209   :  { %v185_v57 = vmul.f32 %v183_v53, %v178_v54  ;;  %v186_v58 = vmul.f32 %v183_v53, %v179_v55 }
 0x20b   :  { %v192_v59 = vadd.f32 %v190_v56, %v185_v57  ;;  %v193_v60 = vadd.f32 %v190_v56, %v186_v58 }
 0x20d   :  { %v194_v61 = vmax.f32 %v192_v59, 0.0  ;;  %v195_v62 = vmax.f32 %v193_v60, 0.0  ;;  %v447_v60 = vld [vmem:[%s700_s9] sm:$0xff] }
 0x20f   :  { %v196_v63 = vmul.f32 %v194_v61, %v624_v22  ;;  %v197_v0 = vmul.f32 %v195_v62, %v626_v23 }
 0x211   :  { %v198_v2 = vpack.c.bf16 %v196_v63, %v196_v63  ;;  %v199_v3 = vpack.c.bf16 %v197_v0, %v197_v0 }
 0x213   :  { %256 = vst [vmem:[#allocation3 + $0x20] sm:$0xf] %v198_v2  ;;  %257 = vst [vmem:[#allocation3 + $0x28] sm:$0xf] %v199_v3  ;;  %272 = vrot.lane.b32.xlu0 %v199_v3, %s522_s3  ;;  %204 = vrot.lane.b32.xlu1 %v198_v2, %s523_s4  ;;  %v217_v4 = vrot.slane %v198_v2, 4  ;;  %v218_v5 = vrot.slane %v199_v3, 4 }
 0x217   :  { %206 = vrot.lane.b32.xlu1 %v199_v3, %s523_s4  ;;  %245 = vrot.lane.b32.xlu0 %v217_v4, %s524_s30 }
 0x21b   :  { %232 = vrot.lane.b32.xlu1 %v198_v2, %s525_s12  ;;  %260 = vrot.lane.b32.xlu0 %v218_v5, %s520_s22 }
 0x21f   :  { %234 = vrot.lane.b32.xlu1 %v199_v3, %s525_s12  ;;  %270 = vrot.lane.b32.xlu0 %v198_v2, %s522_s3 }
 0x223   :  { %297 = vrot.lane.b32.xlu0 %v199_v3, %s521_s23  ;;  %219 = vrot.lane.b32.xlu1 %v217_v4, %s526_s13 }
 0x227   :  { %221 = vrot.lane.b32.xlu1 %v218_v5, %s526_s13 }
 0x22b   :  { %247 = vrot.lane.b32.xlu1 %v218_v5, %s524_s30 }
 0x22f   :  { %258 = vrot.lane.b32.xlu1 %v217_v4, %s520_s22 }
 0x233   :  { %285 = vrot.lane.b32.xlu1 %v218_v5, %s519_s21 }
 0x237   :  { %283 = vrot.lane.b32.xlu1 %v217_v4, %s519_s21 }
 0x23b   :  { %295 = vrot.lane.b32.xlu1 %v198_v2, %s521_s23 }
 0x242   :  { %457 = vadd.xlane.f32.xlu0 %v456_v8 }
 0x25f   :  { %452 = vadd.xlane.f32.xlu1 %v451_v42 }
 0x270   :  { %389 = vperm.xlu1 %508, %v365_v9  }
 0x274   :  { %396 = vperm.xlu1 %508, %v366_v10  }
 0x278   :  { %478 = vperm.xlu1 %508, %v448_v11  }
 0x285   :  { %v273_v12 = vpop.permute.xlu0 %272  ;;  %v205_v13 = vpop.permute.xlu1 %204 }
 0x286   :  { %280 = vst.msk [vmem:[#allocation3 + $0x38] sm:$0xf] %vm279_vm12, %v273_v12  ;;  %vm223_vm12 = vcmask 80896  }
 0x287   :  { %213 = vst.msk [vmem:[#allocation3] sm:$0xf] %vm212_vm13, %v205_v13  ;;  %vm249_vm13 = vcmask 7168  }
 0x288   :  { %282 = vst.msk [vmem:[#allocation3 + $0x38] sm:$0xf] %vm281_vm14, %v518_v1  ;;  %vm291_vm14 = vcmask 965636  }
 0x289   :  { %v207_v14 = vpop.permute.xlu1 %206  ;;  %v246_v15 = vpop.permute.xlu0 %245 }
 0x28a   :  { %v209_v16 = vsel %vm208_vm15, %v205_v13, %v207_v14  ;;  %254 = vst.msk [vmem:[#allocation3 + $0x10] sm:$0xf0] %vm253_vm2, %v246_v15  ;;  %vm293_vm15 = vcmask 1048500  }
 0x28b   :  { %214 = vst [vmem:[#allocation3 + $0x8] sm:$0xf] %v209_v16 }
 0x28d   :  { %v233_v17 = vpop.permute.xlu1 %232  ;;  %v261_v18 = vpop.permute.xlu0 %260 }
 0x28e   :  { %241 = vst.msk [vmem:[#allocation3 + $0x10] sm:$0xf] %vm240_vm3, %v233_v17 }
 0x28f   :  { %267 = vst.msk [vmem:[#allocation3 + $0x28] sm:$0xf0] %vm266_vm5, %v261_v18 }
 0x290   :  { %269 = vst.msk [vmem:[#allocation3 + $0x28] sm:$0xf0] %vm268_vm6, %v518_v1 }
 0x291   :  { %v235_v19 = vpop.permute.xlu1 %234  ;;  %v271_v20 = vpop.permute.xlu0 %270 }
 0x292   :  { %v237_v21 = vsel %vm236_vm7, %v233_v17, %v235_v19  ;;  %v275_v24 = vsel %vm274_vm8, %v271_v20, %v273_v12 }
 0x293   :  { %242 = vst [vmem:[#allocation3 + $0x18] sm:$0xf] %v237_v21  ;;  %278 = vst [vmem:[#allocation3 + $0x30] sm:$0xf] %v275_v24 }
 0x295   :  { %v298_v25 = vpop.permute.xlu0 %297  ;;  %v220_v26 = vpop.permute.xlu1 %219  ;;  %v312_v39 = vld [vmem:[#allocation3 + $0x10] sm:$0xff] }
 0x296   :  { %304 = vst.msk [vmem:[#allocation3 + $0x48] sm:$0xf] %vm303_vm9, %v298_v25 }
 0x297   :  { %228 = vst.msk [vmem:[#allocation3] sm:$0xf0] %vm227_vm10, %v220_v26  ;;  %v315_v40 = vld [vmem:[#allocation3 + $0x28] sm:$0xff] }
 0x298   :  { %306 = vst.msk [vmem:[#allocation3 + $0x48] sm:$0xf] %vm305_vm11, %v518_v1 }
 0x299   :  { %v222_v27 = vpop.permute.xlu1 %221 }
 0x29a   :  { %v224_v28 = vsel %vm223_vm12, %v220_v26, %v222_v27 }
 0x29b   :  { %229 = vst [vmem:[#allocation3 + $0x8] sm:$0xf0] %v224_v28 }
 0x29d   :  { %v248_v29 = vpop.permute.xlu1 %247 }
 0x29e   :  { %v250_v30 = vsel %vm249_vm13, %v246_v15, %v248_v29  ;;  %v310_v34 = vld [vmem:[#allocation3] sm:$0xff] }
 0x29f   :  { %255 = vst [vmem:[#allocation3 + $0x18] sm:$0xf0] %v250_v30  ;;  %v319_v47 = vld [vmem:[#allocation3 + $0x48] sm:$0xff] }
 0x2a1   :  { %v259_v31 = vpop.permute.xlu1 %258 }
 0x2a2   :  { %v262_v32 = vsel %vm58_vm1, %v259_v31, %v261_v18  ;;  %v311_v33 = vld [vmem:[#allocation3 + $0x8] sm:$0xff] }
 0x2a3   :  { %265 = vst [vmem:[#allocation3 + $0x20] sm:$0xf0] %v262_v32  ;;  %324 = vmatprep.subr.bf16.mxu1 %v311_v33 }
 0x2a4   :  { %325 = vmatpush1.bf16.msra.mxu1 %v310_v34 }
 0x2a5   :  { %v286_v35 = vpop.permute.xlu1 %285 }
 0x2a6   :  { %292 = vst.msk [vmem:[#allocation3 + $0x38] sm:$0xf0] %vm291_vm14, %v286_v35  ;;  %v313_v38 = vld [vmem:[#allocation3 + $0x18] sm:$0xff] }
 0x2a7   :  { %294 = vst.msk [vmem:[#allocation3 + $0x38] sm:$0xf0] %vm293_vm15, %v518_v1  ;;  %326 = vmatprep.subr.bf16.mxu1 %v313_v38 }
 0x2a8   :  { %327 = vmatpush1.bf16.msra.mxu1 %v312_v39 }
 0x2a9   :  { %328 = vmatprep.subr.bf16.mxu1 %v315_v40  ;;  %v284_v41 = vpop.permute.xlu1 %283 }
 0x2aa   :  { %v287_v42 = vsel %vm71_vm0, %v284_v41, %v286_v35  ;;  %v314_v43 = vld [vmem:[#allocation3 + $0x20] sm:$0xff]  ;;  %vm320_vm0 = vcmask 654336  }
 0x2ab   :  { %290 = vst [vmem:[#allocation3 + $0x30] sm:$0xf0] %v287_v42 }
 0x2ac   :  { %329 = vmatpush1.bf16.msra.mxu1 %v314_v43 }
 0x2ad   :  { %v296_v44 = vpop.permute.xlu1 %295 }
 0x2ae   :  { %v299_v45 = vsel %vm84_vm4, %v296_v44, %v298_v25  ;;  %v317_v46 = vld [vmem:[#allocation3 + $0x38] sm:$0xff] }
 0x2af   :  { %302 = vst [vmem:[#allocation3 + $0x40] sm:$0xf] %v299_v45  ;;  %330 = vmatprep.subr.bf16.mxu1 %v317_v46 }
 0x2b2   :  { %v316_v48 = vld [vmem:[#allocation3 + $0x30] sm:$0xff] }
 0x2b3   :  { %331 = vmatpush1.bf16.msra.mxu1 %v316_v48 }
 0x2b4   :  { %332 = vmatprep.subr.bf16.mxu1 %v319_v47 }
 0x2b6   :  { %v318_v1 = vld [vmem:[#allocation3 + $0x40] sm:$0xff] }
 0x2b7   :  { %333 = vmatpush1.bf16.msra.mxu1 %v318_v1 }
 0x2ba   :  { %496 = vmatmul.mubr.msk.bf16.vlgmr.msra.gmra.mrb[0].mxu1 %vm320_vm0, %v309_v49 }
 0x2cf   :  { %v458_v63 = vpop.xlane.xlu0 %457 }
 0x2d0   :  { %v460_v0 = vmul.f32 0.0078125, %v458_v63 }
 0x2ec   :  { %v453_v61 = vpop.xlane.xlu1 %452 }
 0x2ed   :  { %v459_v62 = vmul.f32 0.0078125, %v453_v61 }
 0x2ef   :  { %v463_v11 = vsub.f32 %v636_v36, %v459_v62  ;;  %v464_v12 = vsub.f32 %v638_v37, %v459_v62 }
 0x2f0   :  { %v390_v10 = vpop.permute.xlu1 %389 }
 0x2f4   :  { %v397_v14 = vpop.permute.xlu1 %396 }
 0x2f8   :  { %v479_v29 = vpop.permute.xlu1 %478 }
 0x38d   :  { %v358_v50 = vpop.f32.mrb[0].mxu1 }
 0x38e   :  { %v360_v51 = vpop.f32.mrb[1].mxu1  ;;  %v367_v52 = vmul.f32 %v358_v50, %v624_v22  ;;  %v461_v22 = vmul.f32 %v459_v62, %v459_v62 }
 0x38f   :  { %v362_v53 = vpop.f32.mrb[2].mxu1  ;;  %v368_v54 = vmul.f32 %v360_v51, %v626_v23 }
 0x390   :  { %v363_v55 = vpop.f32.mrb[3].mxu1  ;;  %v372_v56 = vmul.f32 %v367_v52, %v358_v50  ;;  %v462_v2 = vsub.f32 %v460_v0, %v461_v22 }
 0x391   :  { %v369_v57 = vadd.f32 %v368_v54, %v367_v52  ;;  %v373_v58 = vmul.f32 %v368_v54, %v360_v51 }
 0x392   :  { %v465_v4 = vadd.f32 1e-05, %v462_v2 }
 0x393   :  { %370 = vadd.xlane.f32.xlu0 %v369_v57  ;;  %v374_v59 = vadd.f32 %v373_v58, %v372_v56 }
 0x394   :  { %514 = vrsqrt.f32 %v465_v4 }
 0x397   :  { %375 = vadd.xlane.f32.xlu0 %v374_v59 }
 0x39e   :  { %v515_v13 = vpop.eup %514 }
 0x39f   :  { %v467_v18 = vmul.f32 %v515_v13, %v463_v11  ;;  %v468_v19 = vmul.f32 %v515_v13, %v464_v12 }
 0x3ad   :  { %471 = vperm.xlu0 %507, %v447_v60  }
 0x420   :  { %v371_v3 = vpop.xlane.xlu0 %370 }
 0x421   :  { %v377_v23 = vmul.f32 0.0078125, %v371_v3 }
 0x423   :  { %v379_v6 = vmul.f32 %v377_v23, %v377_v23  ;;  %v381_v16 = vsub.f32 %v358_v50, %v377_v23  ;;  %v382_v17 = vsub.f32 %v360_v51, %v377_v23 }
 0x424   :  { %v376_v5 = vpop.xlane.xlu0 %375 }
 0x425   :  { %v378_v7 = vmul.f32 0.0078125, %v376_v5 }
 0x427   :  { %v380_v8 = vsub.f32 %v378_v7, %v379_v6 }
 0x429   :  { %v383_v9 = vadd.f32 1e-05, %v380_v8 }
 0x42b   :  { %516 = vrsqrt.f32 %v383_v9 }
 0x42c   :  { %v472_v15 = vpop.permute.xlu0 %471 }
 0x42d   :  { %v474_v25 = vmul.f32 %v472_v15, %v467_v18  ;;  %v475_v26 = vmul.f32 %v472_v15, %v468_v19 }
 0x42f   :  { %v481_v36 = vadd.f32 %v479_v29, %v474_v25  ;;  %v482_v32 = vadd.f32 %v479_v29, %v475_v26 }
 0x435   :  { %v517_v20 = vpop.eup %516 }
 0x436   :  { %v385_v21 = vmul.f32 %v517_v20, %v381_v16  ;;  %v386_v24 = vmul.f32 %v517_v20, %v382_v17 }
 0x438   :  { %v392_v27 = vmul.f32 %v390_v10, %v385_v21  ;;  %v393_v28 = vmul.f32 %v390_v10, %v386_v24 }
 0x43a   :  { %v399_v30 = vadd.f32 %v397_v14, %v392_v27  ;;  %v400_v31 = vadd.f32 %v397_v14, %v393_v28 }
 0x43c   :  { %v483_v37 = vadd.f32 %v481_v36, %v399_v30  ;;  %v484_v33 = vadd.f32 %v482_v32, %v400_v31 }
 0x43e   :  { %v485_v34 = vmax.f32 %v483_v37, 0.0  ;;  %v486_v35 = vmax.f32 %v484_v33, 0.0 }
 0x440   :  { %487 = vst [vmem:[%s701_s11] sm:$0xff] %v485_v34  ;;  %488 = vst [vmem:[%s701_s11 + $0x8] sm:$0xff] %v486_v35 }

</bundles_post_ra>
